<compile_context>
chip_gen: v7x
topology: tpu7x:2x2x1
jax: 0.10.0
libtpu: 0.0.40
codegen_flags: <defaults>
</compile_context>

<pallas_src>
import jax
import jax.numpy as jnp
from jax.experimental import pallas as pl
from jax.experimental.pallas import tpu as pltpu


LANE = 128                      # TPU lane width: batch tiles are lane aligned
TB_ABS_MAX = 65536              # absolute cap on the batch-tile width
TILE_BYTE_BUDGET = 4 << 20      # target bytes per activation tile (Pallas double-buffers)


def _round_up(x, m):
    return (x + m - 1) // m * m


def _pick_batch_tiling(d_in, b):
    """Lane-aligned tile width and padded batch with minimal tail waste."""
    b_lane = _round_up(max(b, 1), LANE)
    bytes_per_col = max(d_in, 1) * 4
    cap = max(LANE, min(TB_ABS_MAX, (TILE_BYTE_BUDGET // bytes_per_col) // LANE * LANE))
    n_tiles = -(-b_lane // cap)                       # ceil-div: number of grid steps
    tb = _round_up(-(-b_lane // n_tiles), LANE)       # spread evenly, lane aligned
    return tb, tb * n_tiles


# ----------------------------- Pallas kernel --------------------------------
def _mlp_kernel(xt_ref, w1_ref, b1_ref, w2_ref, b2_ref, w3_ref, b3_ref, o_ref):
    """One batch tile, transposed layout: every ref is (features, TB)."""
    x = xt_ref[...]                                                     # (d_in, TB)

    z1 = jnp.dot(w1_ref[...], x, preferred_element_type=jnp.float32)    # (16, TB)
    h1 = jnp.maximum(z1 + b1_ref[...], 0.0)

    z2 = jnp.dot(w2_ref[...], h1, preferred_element_type=jnp.float32)   # (32, TB)
    h2 = jnp.maximum(z2 + b2_ref[...], 0.0)

    o_ref[...] = (jnp.dot(w3_ref[...], h2, preferred_element_type=jnp.float32)
                  + b3_ref[...])                                         # (1, TB)


def _run_mlp(xt, w1t, b1c, w2t, b2c, w3t, b3c):
    """xt: (d_in, B) transposed activations -> (1, B) transposed output."""
    d_in, b = xt.shape
    tb, b_pad = _pick_batch_tiling(d_in, b)
    if b_pad != b:
        # Padded columns are independent garbage; sliced off below.
        xt = jnp.pad(xt, ((0, 0), (0, b_pad - b)))

    h1d, h2d, h3d = w1t.shape[0], w2t.shape[0], w3t.shape[0]

    def resident(shape):  # weights/biases: same block every grid step (stay in VMEM)
        return pl.BlockSpec(shape, lambda i: (0, 0))

    out_t = pl.pallas_call(
        _mlp_kernel,
        out_shape=jax.ShapeDtypeStruct((h3d, b_pad), jnp.float32),
        grid=(b_pad // tb,),
        in_specs=[
            pl.BlockSpec((d_in, tb), lambda i: (0, i)),   # batch-tiled activations
            resident((h1d, d_in)), resident((h1d, 1)),
            resident((h2d, h1d)), resident((h2d, 1)),
            resident((h3d, h2d)), resident((h3d, 1)),
        ],
        out_specs=pl.BlockSpec((h3d, tb), lambda i: (0, i)),
        compiler_params=pltpu.CompilerParams(
            dimension_semantics=("parallel",),            # megacore / dual-TC split
            vmem_limit_bytes=32 * 1024 * 1024,
        ),
    )(xt, w1t, b1c, w2t, b2c, w3t, b3c)
    return out_t[:, :b]


# ------------------------------ Model setup ---------------------------------
def _bn_affine(gamma, beta, running_mean, running_var, eps=1e-5):
    """Fold eval-mode BatchNorm1d into a per-feature (scale, shift)."""
    inv = gamma / jnp.sqrt(running_var + eps)
    return inv, beta - running_mean * inv


def make_params(key, cat_unique_levels, n_cont):
    # embedding_sizes = [(n_categories, min(50, (n_categories + 1) // 2))]
    emb_sizes = [(n, min(50, (n + 1) // 2)) for n in cat_unique_levels]
    n_emb = sum(d for _, d in emb_sizes)
    d_in = n_emb + n_cont

    keys = jax.random.split(key, 16)
    ki = iter(range(16))

    emb_tables = [jax.random.normal(keys[next(ki)], (n, d), jnp.float32) * 0.1
                  for n, d in emb_sizes]

    def linear(kw, kb, fan_in, fan_out):
        w = jax.random.normal(kw, (fan_in, fan_out), jnp.float32) / jnp.sqrt(fan_in)
        b = jax.random.normal(kb, (fan_out,), jnp.float32) * 0.01
        return w, b

    w1, b1 = linear(keys[next(ki)], keys[next(ki)], d_in, 16)
    w2, b2 = linear(keys[next(ki)], keys[next(ki)], 16, 32)
    w3, b3 = linear(keys[next(ki)], keys[next(ki)], 32, 1)

    # Deterministic eval-mode BatchNorm running stats / affine params.
    def bn(dim, off):
        gamma = 1.0 + 0.01 * jnp.arange(dim, dtype=jnp.float32)
        beta = 0.02 * jnp.arange(dim, dtype=jnp.float32) - 0.05
        r_mean = 0.03 * jnp.arange(dim, dtype=jnp.float32) + off
        r_var = 1.0 + 0.05 * jnp.arange(dim, dtype=jnp.float32)
        return _bn_affine(gamma, beta, r_mean, r_var)

    bn1_s, bn1_f = bn(n_cont, 0.1)
    bn2_s, bn2_f = bn(16, 0.0)
    bn3_s, bn3_f = bn(32, 0.0)

    # ---- Fold every affine into the Linear weights (host side, exact) ------
    # bn1 touches only the continuous columns; embedding columns pass through.
    pre_s = jnp.concatenate([jnp.ones((n_emb,), jnp.float32), bn1_s])   # (d_in,)
    pre_f = jnp.concatenate([jnp.zeros((n_emb,), jnp.float32), bn1_f])  # (d_in,)

    # lin1(u*pre_s + pre_f) = u @ (diag(pre_s) W1) + (pre_f W1 + b1)
    w1f = pre_s[:, None] * w1
    b1f = pre_f @ w1 + b1
    # lin2(bn2(relu(.))) = relu(.) @ (diag(s2) W2) + (f2 W2 + b2)
    w2f = bn2_s[:, None] * w2
    b2f = bn2_f @ w2 + b2
    # lin3(bn3(relu(.))) = relu(.) @ (diag(s3) W3) + (f3 W3 + b3)
    w3f = bn3_s[:, None] * w3
    b3f = bn3_f @ w3 + b3

    # Transposed storage for the batch-on-lanes kernel: (out_features, in_features)
    return dict(
        emb_tables=emb_tables, n_emb=n_emb, n_cont=n_cont,
        w1t=w1f.T, b1c=b1f.reshape(16, 1),
        w2t=w2f.T, b2c=b2f.reshape(32, 1),
        w3t=w3f.T, b3c=b3f.reshape(1, 1),
    )


@jax.jit
def simple_model_forward(params, x_cat, x_cont):
    # Embedding gathers + concat stay in XLA glue (tables total a few KiB); they
    # are built directly in (d_in, B) layout so gather+concat+transpose fuse.
    # TODO(synk): fuse the gather into the kernel via scalar-prefetched row ids
    # to avoid materializing the (d_in, B) activation in HBM.
    parts_t = [tab[x_cat[:, i]].T for i, tab in enumerate(params["emb_tables"])]
    parts_t.append(x_cont.astype(jnp.float32).T)
    u_t = jnp.concatenate(parts_t, axis=0)                            # (d_in, B)
    out_t = _run_mlp(u_t,
                     params["w1t"], params["b1c"],
                     params["w2t"], params["b2c"],
                     params["w3t"], params["b3c"])                    # (1, B)
    return out_t.T                                                    # (B, 1)


# --------------------------------- main --------------------------------------
if __name__ == "__main__":
    key = jax.random.PRNGKey(0)
    k_par, k_cat, k_cont = jax.random.split(key, 3)

    batch = 8
    cat_unique_levels = [5, 7, 10]          # -> emb dims [3, 4, 5], n_emb = 12
    n_cont = 4                              # -> lin1 input dim = 12 + 4 = 16

    params = make_params(k_par, cat_unique_levels, n_cont)

    x_cat = jnp.stack(
        [jax.random.randint(jax.random.fold_in(k_cat, i), (batch,), 0, n)
         for i, n in enumerate(cat_unique_levels)], axis=1).astype(jnp.int32)
    x_cont = jax.random.normal(k_cont, (batch, n_cont), jnp.float32)

    out = simple_model_forward(params, x_cat, x_cont)
    jax.block_until_ready(out)
    assert out.shape == (batch, 1) and out.dtype == jnp.float32
    print("KERNEL_OK")
</pallas_src>

<mosaic_0001>
module attributes {stable_mosaic.version = 11 : i64} {
  func.func @_mlp_kernel(%arg0: i32, %arg1: memref<16x128xf32, #tpu.memory_space<vmem>>, %arg2: memref<16x16xf32, #tpu.memory_space<vmem>>, %arg3: memref<16x1xf32, #tpu.memory_space<vmem>>, %arg4: memref<32x16xf32, #tpu.memory_space<vmem>>, %arg5: memref<32x1xf32, #tpu.memory_space<vmem>>, %arg6: memref<1x32xf32, #tpu.memory_space<vmem>>, %arg7: memref<1x1xf32, #tpu.memory_space<vmem>>, %arg8: memref<1x128xf32, #tpu.memory_space<vmem>>) attributes {dimension_semantics = [#tpu.dimension_semantics<parallel>], iteration_bounds = array<i64: 1>, scalar_prefetch = 0 : i64, scratch_operands = 0 : i64, tpu.core_type = #tpu.core_type<tc>, window_params = [{transform_indices = @transform_0, window_bounds = array<i64: 16, 128>}, {pipeline_mode = #tpu.pipeline_mode<synchronous>, transform_indices = @transform_1, window_bounds = array<i64: 16, 16>}, {pipeline_mode = #tpu.pipeline_mode<synchronous>, transform_indices = @transform_2, window_bounds = array<i64: 16, 1>}, {pipeline_mode = #tpu.pipeline_mode<synchronous>, transform_indices = @transform_3, window_bounds = array<i64: 32, 16>}, {pipeline_mode = #tpu.pipeline_mode<synchronous>, transform_indices = @transform_4, window_bounds = array<i64: 32, 1>}, {pipeline_mode = #tpu.pipeline_mode<synchronous>, transform_indices = @transform_5, window_bounds = array<i64: 1, 32>}, {pipeline_mode = #tpu.pipeline_mode<synchronous>, transform_indices = @transform_6, window_bounds = array<i64: 1, 1>}, {transform_indices = @transform_7, window_bounds = array<i64: 1, 128>}]} {
    %c0 = arith.constant 0 : index
    %c0_0 = arith.constant 0 : index
    %0 = vector.load %arg1[%c0, %c0_0] : memref<16x128xf32, #tpu.memory_space<vmem>>, vector<16x128xf32>
    %c0_1 = arith.constant 0 : index
    %c0_2 = arith.constant 0 : index
    %1 = vector.load %arg2[%c0_1, %c0_2] : memref<16x16xf32, #tpu.memory_space<vmem>>, vector<16x16xf32>
    %cst = arith.constant dense<0.000000e+00> : vector<16x128xf32>
    %2 = tpu.matmul %1, %0, %cst {dimension_numbers = #tpu.dot_dimension_numbers<[1], [0], [0], [1], [0, 0, 1, 1], [], []>} : vector<16x16xf32>, vector<16x128xf32>, vector<16x128xf32> -> vector<16x128xf32>
    %c0_3 = arith.constant 0 : index
    %c0_4 = arith.constant 0 : index
    %3 = vector.load %arg3[%c0_3, %c0_4] : memref<16x1xf32, #tpu.memory_space<vmem>>, vector<16x1xf32>
    %4 = vector.broadcast %3 : vector<16x1xf32> to vector<16x128xf32>
    %5 = arith.addf %2, %4 : vector<16x128xf32>
    %cst_5 = arith.constant 0.000000e+00 : f32
    %6 = vector.broadcast %cst_5 : f32 to vector<16x128xf32>
    %7 = arith.maximumf %5, %6 : vector<16x128xf32>
    %c0_6 = arith.constant 0 : index
    %c0_7 = arith.constant 0 : index
    %8 = vector.load %arg4[%c0_6, %c0_7] : memref<32x16xf32, #tpu.memory_space<vmem>>, vector<32x16xf32>
    %cst_8 = arith.constant dense<0.000000e+00> : vector<32x128xf32>
    %9 = tpu.matmul %8, %7, %cst_8 {dimension_numbers = #tpu.dot_dimension_numbers<[1], [0], [0], [1], [0, 0, 1, 1], [], []>} : vector<32x16xf32>, vector<16x128xf32>, vector<32x128xf32> -> vector<32x128xf32>
    %c0_9 = arith.constant 0 : index
    %c0_10 = arith.constant 0 : index
    %10 = vector.load %arg5[%c0_9, %c0_10] : memref<32x1xf32, #tpu.memory_space<vmem>>, vector<32x1xf32>
    %11 = vector.broadcast %10 : vector<32x1xf32> to vector<32x128xf32>
    %12 = arith.addf %9, %11 : vector<32x128xf32>
    %cst_11 = arith.constant 0.000000e+00 : f32
    %13 = vector.broadcast %cst_11 : f32 to vector<32x128xf32>
    %14 = arith.maximumf %12, %13 : vector<32x128xf32>
    %c0_12 = arith.constant 0 : index
    %c0_13 = arith.constant 0 : index
    %15 = vector.load %arg6[%c0_12, %c0_13] : memref<1x32xf32, #tpu.memory_space<vmem>>, vector<1x32xf32>
    %cst_14 = arith.constant dense<0.000000e+00> : vector<1x128xf32>
    %16 = tpu.matmul %15, %14, %cst_14 {dimension_numbers = #tpu.dot_dimension_numbers<[1], [0], [0], [1], [0, 0, 1, 1], [], []>} : vector<1x32xf32>, vector<32x128xf32>, vector<1x128xf32> -> vector<1x128xf32>
    %c0_15 = arith.constant 0 : index
    %c0_16 = arith.constant 0 : index
    %17 = vector.load %arg7[%c0_15, %c0_16] : memref<1x1xf32, #tpu.memory_space<vmem>>, vector<1x1xf32>
    %18 = vector.broadcast %17 : vector<1x1xf32> to vector<1x128xf32>
    %19 = arith.addf %16, %18 : vector<1x128xf32>
    %c0_17 = arith.constant 0 : index
    %c0_18 = arith.constant 0 : index
    %20 = vector.load %arg8[%c0_17, %c0_18] : memref<1x128xf32, #tpu.memory_space<vmem>>, vector<1x128xf32>
    tpu.vector_store %arg8[%c0_17, %c0_18], %19 {strides = array<i32>} : memref<1x128xf32, #tpu.memory_space<vmem>>, vector<1x128xf32>,
    return
  }
  func.func @transform_0(%arg0: i32) -> (i32, i32) {
    %c0_i32 = arith.constant 0 : i32
    %c0_i32_0 = arith.constant 0 : i32
    return %c0_i32, %arg0 : i32, i32
  }
  func.func @transform_1(%arg0: i32) -> (i32, i32) {
    %c0_i32 = arith.constant 0 : i32
    %c0_i32_0 = arith.constant 0 : i32
    %c0_i32_1 = arith.constant 0 : i32
    return %c0_i32, %c0_i32_0 : i32, i32
  }
  func.func @transform_2(%arg0: i32) -> (i32, i32) {
    %c0_i32 = arith.constant 0 : i32
    %c0_i32_0 = arith.constant 0 : i32
    %c0_i32_1 = arith.constant 0 : i32
    return %c0_i32, %c0_i32_0 : i32, i32
  }
  func.func @transform_3(%arg0: i32) -> (i32, i32) {
    %c0_i32 = arith.constant 0 : i32
    %c0_i32_0 = arith.constant 0 : i32
    %c0_i32_1 = arith.constant 0 : i32
    return %c0_i32, %c0_i32_0 : i32, i32
  }
  func.func @transform_4(%arg0: i32) -> (i32, i32) {
    %c0_i32 = arith.constant 0 : i32
    %c0_i32_0 = arith.constant 0 : i32
    %c0_i32_1 = arith.constant 0 : i32
    return %c0_i32, %c0_i32_0 : i32, i32
  }
  func.func @transform_5(%arg0: i32) -> (i32, i32) {
    %c0_i32 = arith.constant 0 : i32
    %c0_i32_0 = arith.constant 0 : i32
    %c0_i32_1 = arith.constant 0 : i32
    return %c0_i32, %c0_i32_0 : i32, i32
  }
  func.func @transform_6(%arg0: i32) -> (i32, i32) {
    %c0_i32 = arith.constant 0 : i32
    %c0_i32_0 = arith.constant 0 : i32
    %c0_i32_1 = arith.constant 0 : i32
    return %c0_i32, %c0_i32_0 : i32, i32
  }
  func.func @transform_7(%arg0: i32) -> (i32, i32) {
    %c0_i32 = arith.constant 0 : i32
    %c0_i32_0 = arith.constant 0 : i32
    return %c0_i32, %arg0 : i32, i32
  }
}

</mosaic_0001>

<bundles_post_ra>
// kernel: simple_model_forward.1
= control target key start
LH: loop header
LB: loop body
LE: loop exit
PB: predicated region body
PF: predicated region fallthrough
CT: control target
= control target key end

     0   :  { %vm44_vm0 = vcmask 130048   ;;  %v417_v3 = vmov 0   ;;  %v418_v27 = vmov 0.0|0.0   ;;  %vm419_vm1 = vmmov 0   ;;  %s518_s0 = inlined_call_operand.vmem [shape: f32[16,128], index: 0, kind: input, shape index: {}]   ;;  %s519_s1 = inlined_call_operand.vmem [shape: f32[16,16], index: 1, kind: input, shape index: {}]   ;;  %s520_s2 = inlined_call_operand.vmem [shape: f32[16,1], index: 2, kind: input, shape index: {}]   ;;  %s521_s6 = inlined_call_operand.<no memory space> [shape: f32[1,1], index: 6, kind: input, shape index: {}]   ;;  %s522_s4 = inlined_call_operand.vmem [shape: f32[32,1], index: 4, kind: input, shape index: {}]   ;;  %s523_s3 = inlined_call_operand.vmem [shape: f32[32,16], index: 3, kind: input, shape index: {}]   ;;  %s524_s5 = inlined_call_operand.vmem [shape: f32[1,32], index: 5, kind: input, shape index: {}]   ;;  %s525_s7 = inlined_call_operand.vmem [shape: f32[1,128], index: 7, kind: output, shape index: {}]  }
   0x1   :  { %v28_v0 = vld [vmem:[%s518_s0] sm:$0xff]  ;;  %v29_v1 = vld [vmem:[%s518_s0 + $0x8] sm:$0xff]  ;;  %415 = vset.pattern.permute.xlu0 %v417_v3  ;;  %v12_v4 = vstv %s521_s6  ;;  %416 = vset.pattern.permute.xlu1 %v417_v3  ;;  %v134_v9 = vld [vmem:[%s522_s4 + $0x10] sm:$0xff]  ;;  %v420_v28 = vmov 0.0   ;;  %vm268_vm2 = vcmask 261120   ;;  %v264_v48 = vlaneseq }
   0x2   :  { %v30_v2 = vld [vmem:[%s519_s1] sm:$0xff]  ;;  %v397_v5 = vpack.c.bf16 %v29_v1, %v28_v0  ;;  %13 = vst [vmem:[#allocation2] sm:$0x1] %v12_v4  ;;  %v33_v7 = vld [vmem:[%s520_s2 + $0x8] sm:$0xff]  ;;  %v135_v14 = vld [vmem:[%s522_s4 + $0x18] sm:$0xff] }
   0x3   :  { %373 = vmatprep.mubr.msk.f32.mxu0 %vm44_vm0, %v30_v2  ;;  %v32_v6 = vld [vmem:[%s520_s2] sm:$0xff]  ;;  %v31_v8 = vld [vmem:[%s519_s1 + $0x8] sm:$0xff]  ;;  %v130_v25 = vld [vmem:[%s523_s3 + $0x10] sm:$0xff]  ;;  %v265_v49 = vshrl.u32 %v264_v48, 7 }
   0x4   :  { %36 = vperm.xlu0 %415, %v32_v6   ;;  %398 = vmatprep.subr.bf16.mxu0 %v397_v5  ;;  %v128_v11 = vld [vmem:[%s523_s3] sm:$0xff]  ;;  %v133_v13 = vld [vmem:[%s522_s4 + $0x8] sm:$0xff]  ;;  %v131_v26 = vld [vmem:[%s523_s3 + $0x18] sm:$0xff] }
   0x5   :  { %400 = vmatpush3.bf16.msra.mxu0 %v397_v5  ;;  %380 = vmatprep.mubr.msk.f32.mxu1 %vm44_vm0, %v128_v11  ;;  %v132_v12 = vld [vmem:[%s522_s4] sm:$0xff]  ;;  %v129_v24 = vld [vmem:[%s523_s3 + $0x8] sm:$0xff]  ;;  %v266_v50 = vsub.s32 0, %v265_v49 }
   0x6   :  { %138 = vperm.xlu1 %416, %v132_v12   ;;  %405 = vmatprep.subr.bf16.mxu0 %v418_v27  ;;  %v257_v47 = vld [vmem:[%s524_s5] sm:$0x1] }
   0x8   :  { %41 = vperm.xlu0 %415, %v33_v7   ;;  %374 = vmatmul.mubr.msk.f32.vlgmr.msra.gmra.mrb[0].mxu0 %vm44_vm0, %v31_v8 }
   0x9   :  { %v258_v10 = vld [vmem:[#allocation2] sm:$0x1]  ;;  %394 = vmatprep.mubr.msk.f32.mxu0 %vm419_vm1, %v420_v28 }
   0xa   :  { %143 = vperm.xlu1 %416, %v133_v13  }
   0xc   :  { %148 = vperm.xlu0 %415, %v134_v9  }
   0xe   :  { %153 = vperm.xlu1 %416, %v135_v14  }
  0x10   :  { %261 = vperm.xlu0 %415, %v258_v10  }
  0x83   :  { %v37_v15 = vpop.permute.xlu0 %36 }
  0x85   :  { %v139_v29 = vpop.permute.xlu1 %138 }
  0x87   :  { %v42_v16 = vpop.permute.xlu0 %41 }
  0x89   :  { %v144_v30 = vpop.permute.xlu1 %143 }
  0x8b   :  { %v149_v39 = vpop.permute.xlu0 %148 }
  0x8d   :  { %v154_v36 = vpop.permute.xlu1 %153 }
  0x8f   :  { %v262_v51 = vpop.permute.xlu0 %261 }
  0x90   :  { %v267_v52 = vrot.slane %v262_v51, %v266_v50 }
  0xdb   :  { %v375_v17 = vpop.f32.mrb[0].mxu0 }
  0xdc   :  { %v123_v18 = vadd.f32 %v375_v17, %v42_v16  ;;  %v117_v19 = vpop.f32.mrb[1].mxu0 }
  0xdd   :  { %v118_v20 = vadd.f32 %v117_v19, %v37_v15 }
  0xde   :  { %v127_v21 = vmax.f32 %v123_v18, 0.0 }
  0xdf   :  { %v126_v22 = vmax.f32 %v118_v20, 0.0 }
  0xe1   :  { %v401_v23 = vpack.c.bf16 %v127_v21, %v126_v22 }
  0xe3   :  { %402 = vmatprep.subr.bf16.mxu1 %v401_v23 }
  0xe4   :  { %404 = vmatpush3.bf16.msra.mxu1 %v401_v23 }
  0xe7   :  { %381 = vmatmul.mubr.msk.f32.vlgmr.msra.gmra.mrb[0].mxu1 %vm44_vm0, %v129_v24 }
  0xe8   :  { %383 = vmatprep.mubr.msk.f32.mxu1 %vm44_vm0, %v130_v25 }
  0xeb   :  { %384 = vmatmul.mubr.msk.f32.gmra.mrb[2].mxu1 %vm44_vm0, %v131_v26 }
 0x1ba   :  { %v382_v31 = vpop.f32.mrb[0].mxu1 }
 0x1bb   :  { %v240_v32 = vadd.f32 %v382_v31, %v144_v30  ;;  %v234_v33 = vpop.f32.mrb[1].mxu1 }
 0x1bc   :  { %v235_v34 = vadd.f32 %v234_v33, %v139_v29 }
 0x1bd   :  { %v254_v35 = vmax.f32 %v240_v32, 0.0 }
 0x1be   :  { %v253_v37 = vmax.f32 %v235_v34, 0.0  ;;  %v385_v38 = vpop.f32.mrb[2].mxu1 }
 0x1bf   :  { %v250_v40 = vadd.f32 %v385_v38, %v154_v36  ;;  %v244_v41 = vpop.f32.mrb[3].mxu1 }
 0x1c0   :  { %v406_v42 = vpack.c.bf16 %v254_v35, %v253_v37  ;;  %v245_v43 = vadd.f32 %v244_v41, %v149_v39 }
 0x1c1   :  { %v256_v44 = vmax.f32 %v250_v40, 0.0 }
 0x1c2   :  { %v255_v45 = vmax.f32 %v245_v43, 0.0  ;;  %407 = vmatpush3.bf16.msra.mxu0 %v406_v42 }
 0x1c3   :  { %408 = vmatprep.subr.bf16.mxu0 %v418_v27 }
 0x1c4   :  { %v409_v46 = vpack.c.bf16 %v256_v44, %v255_v45 }
 0x1c6   :  { %410 = vmatpush3.bf16.msra.mxu0 %v409_v46 }
 0x1c9   :  { %395 = vmatmul.mubr.msk.f32.vlgmr.msra.gmra.mrb[2].mxu0 %vm268_vm2, %v257_v47 }
 0x29c   :  { %v338_v53 = vpop.f32.mrb[2].mxu0 }
 0x29d   :  { %v339_v54 = vadd.f32 %v338_v53, %v267_v52  ;;  %v396_v55 = vpop.f32.mrb[3].mxu0 }
 0x29f   :  { %342 = vst [vmem:[%s525_s7] sm:$0x1] %v339_v54 }

</bundles_post_ra>
